<compile_context>
chip_gen: v7x
topology: tpu7x:2x2x1
jax: 0.10.0
libtpu: 0.0.40
codegen_flags: <defaults>
</compile_context>

<pallas_src>
import jax
import jax.numpy as jnp
from jax.experimental import pallas as pl
from jax.experimental.pallas import tpu as pltpu


def _ensemble_kernel(w_ref, y0_ref, y1_ref, y2_ref, o_ref):
    # w_ref: SMEM (3,) f32 scalars; y*_ref / o_ref: VMEM (TB, TN) tiles.
    w0 = w_ref[0]
    w1 = w_ref[1]
    w2 = w_ref[2]
    # Compute in f32 in-vreg (free under DMA; v5e has no bf16 VALU), write back
    # in the output's native dtype.
    y0 = y0_ref[...].astype(jnp.float32)
    y1 = y1_ref[...].astype(jnp.float32)
    y2 = y2_ref[...].astype(jnp.float32)
    # (w * cat([y0,y1,y2],-1)).sum(-1) == w0*y0 + w1*y1 + w2*y2 (same add order)
    o_ref[...] = (w0 * y0 + w1 * y1 + w2 * y2).astype(o_ref.dtype)


def _choose_view(shape):
    """Pick a free (contiguous, row-major) 2D (rows, lanes) view of the array."""
    total = 1
    for d in shape:
        total *= d
    n_last = shape[-1]
    if n_last % 128 == 0:
        lanes = n_last
    else:
        lanes = None
        # Try a lane-dense re-view: free because the op is elementwise and the
        # flatten/reshape is contiguous.
        for cand in (2048, 1024, 512, 256, 128):
            if total % cand == 0:
                lanes = cand
                break
        if lanes is None:
            # Ragged trailing dim with no free 128-multiple re-view: keep the
            # full trailing dim as the lane block (contiguous DMA; the partial
            # last vreg's masked stores are hidden under the HBM DMA).
            lanes = n_last
    rows = total // lanes
    return rows, lanes, total


def _choose_tiles(rows, lanes, *, dtype_bytes, tile_bytes=1 << 20, max_tn=2048):
    """Pick (TB, TN): ~tile_bytes per tile, respecting the (8,128) block rule."""
    if lanes % 128 == 0:
        tn = min(lanes, max_tn)          # lane-dense, unmasked stores
    else:
        tn = lanes                       # full-dim block (rule satisfied by equality)
    # Byte budget uses the VMEM-padded lane width (lanes round up to 128).
    tn_padded = ((tn + 127) // 128) * 128
    row_budget = max(1, tile_bytes // max(1, tn_padded * dtype_bytes))
    tb = max(8, (row_budget // 8) * 8)
    if rows < 8:
        tb = rows                        # full-dim block (rule satisfied by equality)
    else:
        tb = min(tb, (rows // 8) * 8)    # multiple of 8; ragged last block is masked
    return tb, tn


def deep_promise_ensemble(w, y0, y1, y2, *, tile_bytes=1 << 20):
    """Pallas implementation of DeepPromiseEnsemble.forward given the three
    sub-model outputs y0, y1, y2 (any shape, identical) and weights w (3,)."""
    orig_shape = y0.shape
    assert y1.shape == orig_shape and y2.shape == orig_shape
    assert w.shape == (3,)
    out_dtype = y0.dtype

    if y0.ndim == 0:
        # Trivial scalar case; not worth a kernel launch.
        wf = w.astype(jnp.float32)
        return (wf[0] * y0 + wf[1] * y1 + wf[2] * y2).astype(out_dtype)

    rows, lanes, total = _choose_view(orig_shape)
    y0_2d = y0.reshape(rows, lanes)
    y1_2d = y1.reshape(rows, lanes)
    y2_2d = y2.reshape(rows, lanes)

    dtype_bytes = jnp.dtype(out_dtype).itemsize
    tb, tn = _choose_tiles(rows, lanes, dtype_bytes=dtype_bytes,
                           tile_bytes=tile_bytes)
    grid = (pl.cdiv(rows, tb), pl.cdiv(lanes, tn))

    # v7x: make sure both TensorCores (each with its own HBM path) get work
    # whenever the problem is bigger than one small tile.  No-op on v5e/v6e.
    if grid[0] * grid[1] == 1 and rows >= 16:
        tb = max(8, (((rows + 1) // 2 + 7) // 8) * 8)
        grid = (pl.cdiv(rows, tb), grid[1])

    tile_spec = pl.BlockSpec((tb, tn), lambda i, j: (i, j))

    out = pl.pallas_call(
        _ensemble_kernel,
        out_shape=jax.ShapeDtypeStruct((rows, lanes), out_dtype),
        grid=grid,
        in_specs=[
            pl.BlockSpec(memory_space=pltpu.SMEM),  # w: (3,) scalars in SMEM
            tile_spec,                              # y0
            tile_spec,                              # y1
            tile_spec,                              # y2
        ],
        out_specs=tile_spec,
        compiler_params=pltpu.CompilerParams(
            dimension_semantics=("parallel", "parallel")),
        cost_estimate=pl.CostEstimate(
            flops=5 * total,
            transcendentals=0,
            bytes_accessed=4 * total * dtype_bytes + 3 * 4),
    )(w.astype(jnp.float32), y0_2d, y1_2d, y2_2d)

    return out.reshape(orig_shape)


# ---------------------------------------------------------------------------
# Synthetic deterministic sub-models (external to the ensemble module itself).
# Each: y = tanh(x @ W_i + b_i), x: (B, D) -> y: (B, N).
# TODO(synk): the sub-models are arbitrary external nn.Modules in the original;
# they are modeled here in plain JAX, not translated into Pallas.
# ---------------------------------------------------------------------------
def make_submodel_params(key, d, n, n_models=3):
    params = []
    for _ in range(n_models):
        kw, kb, key = jax.random.split(key, 3)
        W = jax.random.normal(kw, (d, n), dtype=jnp.float32) * 0.1
        b = jax.random.normal(kb, (n,), dtype=jnp.float32) * 0.01
        params.append((W, b))
    return params


def submodel_forward(params, x):
    W, b = params
    return jnp.tanh(x @ W + b)


def _reference(w, y0, y1, y2):
    stacked = jnp.stack([y0, y1, y2], axis=-1)   # cat of unsqueeze(-1)
    return (w * stacked).sum(axis=-1)


if __name__ == "__main__":
    key = jax.random.PRNGKey(0)

    # ---- primary small demo: (B, D) -> three sub-model outputs (B, N) ----
    B, D, N = 16, 32, 128
    kx, kp, kz = jax.random.split(key, 3)
    x = jax.random.normal(kx, (B, D), dtype=jnp.float32)
    sub_params = make_submodel_params(kp, D, N, n_models=3)

    # Module parameter: self.w = nn.Parameter(torch.tensor([0.3, 0.3, 0.3]))
    w = jnp.array([0.3, 0.3, 0.3], dtype=jnp.float32)

    y0 = submodel_forward(sub_params[0], x)
    y1 = submodel_forward(sub_params[1], x)
    y2 = submodel_forward(sub_params[2], x)

    out = deep_promise_ensemble(w, y0, y1, y2)
    out = jax.block_until_ready(out)
    ref = _reference(w, y0, y1, y2)
    assert out.shape == (B, N)
    assert out.dtype == y0.dtype
    assert jnp.allclose(out, ref, atol=1e-6, rtol=1e-6)

    # ---- robustness check: 3-D, row-count not a multiple of 8, N not a
    #      multiple of 128 (exercises the no-pad masked-boundary path) ----
    z_shape = (2, 5, 200)
    k0, k1, k2 = jax.random.split(kz, 3)
    z0 = jax.random.normal(k0, z_shape, dtype=jnp.float32)
    z1 = jax.random.normal(k1, z_shape, dtype=jnp.float32)
    z2 = jax.random.normal(k2, z_shape, dtype=jnp.float32)
    out2 = jax.block_until_ready(deep_promise_ensemble(w, z0, z1, z2))
    ref2 = _reference(w, z0, z1, z2)
    assert out2.shape == z_shape
    assert jnp.allclose(out2, ref2, atol=1e-6, rtol=1e-6)

    print("KERNEL_OK")
</pallas_src>

<mosaic_0001>
module attributes {stable_mosaic.version = 11 : i64} {
  func.func @_ensemble_kernel(%arg0: i32, %arg1: i32, %arg2: memref<3xf32, #tpu.memory_space<smem>>, %arg3: memref<8x128xf32, #tpu.memory_space<vmem>>, %arg4: memref<8x128xf32, #tpu.memory_space<vmem>>, %arg5: memref<8x128xf32, #tpu.memory_space<vmem>>, %arg6: memref<8x128xf32, #tpu.memory_space<vmem>>) attributes {dimension_semantics = [#tpu.dimension_semantics<parallel>, #tpu.dimension_semantics<parallel>], iteration_bounds = array<i64: 2, 1>, scalar_prefetch = 0 : i64, scratch_operands = 0 : i64, tpu.core_type = #tpu.core_type<tc>, window_params = [{transform_indices = @transform_0, window_bounds = array<i64: 3>}, {transform_indices = @transform_1, window_bounds = array<i64: 8, 128>}, {transform_indices = @transform_2, window_bounds = array<i64: 8, 128>}, {transform_indices = @transform_3, window_bounds = array<i64: 8, 128>}, {transform_indices = @transform_4, window_bounds = array<i64: 8, 128>}]} {
    %c0 = arith.constant 0 : index
    %0 = memref.load %arg2[%c0] : memref<3xf32, #tpu.memory_space<smem>>
    %c1 = arith.constant 1 : index
    %1 = memref.load %arg2[%c1] : memref<3xf32, #tpu.memory_space<smem>>
    %c2 = arith.constant 2 : index
    %2 = memref.load %arg2[%c2] : memref<3xf32, #tpu.memory_space<smem>>
    %c0_0 = arith.constant 0 : index
    %c0_1 = arith.constant 0 : index
    %3 = vector.load %arg3[%c0_0, %c0_1] : memref<8x128xf32, #tpu.memory_space<vmem>>, vector<8x128xf32>
    %c0_2 = arith.constant 0 : index
    %c0_3 = arith.constant 0 : index
    %4 = vector.load %arg4[%c0_2, %c0_3] : memref<8x128xf32, #tpu.memory_space<vmem>>, vector<8x128xf32>
    %c0_4 = arith.constant 0 : index
    %c0_5 = arith.constant 0 : index
    %5 = vector.load %arg5[%c0_4, %c0_5] : memref<8x128xf32, #tpu.memory_space<vmem>>, vector<8x128xf32>
    %6 = vector.broadcast %0 : f32 to vector<8x128xf32>
    %7 = arith.mulf %6, %3 : vector<8x128xf32>
    %8 = vector.broadcast %1 : f32 to vector<8x128xf32>
    %9 = arith.mulf %8, %4 : vector<8x128xf32>
    %10 = arith.addf %7, %9 : vector<8x128xf32>
    %11 = vector.broadcast %2 : f32 to vector<8x128xf32>
    %12 = arith.mulf %11, %5 : vector<8x128xf32>
    %13 = arith.addf %10, %12 : vector<8x128xf32>
    %c0_6 = arith.constant 0 : index
    %c0_7 = arith.constant 0 : index
    %14 = vector.load %arg6[%c0_6, %c0_7] : memref<8x128xf32, #tpu.memory_space<vmem>>, vector<8x128xf32>
    tpu.vector_store %arg6[%c0_6, %c0_7], %13 {strides = array<i32>} : memref<8x128xf32, #tpu.memory_space<vmem>>, vector<8x128xf32>,
    return
  }
  func.func @transform_0(%arg0: i32, %arg1: i32) -> i32 {
    %c0_i32 = arith.constant 0 : i32
    %c0_i32_0 = arith.constant 0 : i32
    return %c0_i32 : i32
  }
  func.func @transform_1(%arg0: i32, %arg1: i32) -> (i32, i32) {
    %c0_i32 = arith.constant 0 : i32
    return %arg0, %arg1 : i32, i32
  }
  func.func @transform_2(%arg0: i32, %arg1: i32) -> (i32, i32) {
    %c0_i32 = arith.constant 0 : i32
    return %arg0, %arg1 : i32, i32
  }
  func.func @transform_3(%arg0: i32, %arg1: i32) -> (i32, i32) {
    %c0_i32 = arith.constant 0 : i32
    return %arg0, %arg1 : i32, i32
  }
  func.func @transform_4(%arg0: i32, %arg1: i32) -> (i32, i32) {
    %c0_i32 = arith.constant 0 : i32
    return %arg0, %arg1 : i32, i32
  }
}

</mosaic_0001>

<bundles_post_ra>
// kernel: tpu_custom_call.1
= control target key start
LH: loop header
LB: loop body
LE: loop exit
PB: predicated region body
PF: predicated region fallthrough
CT: control target
= control target key end

     0   :  { %s1107_s0 = inlined_call_operand.hbm [shape: f32[3], index: 0, kind: input, shape index: {}]   ;;  %s1108_s1 = inlined_call_operand.hbm [shape: f32[16,128], index: 1, kind: input, shape index: {}]   ;;  %s1109_s2 = inlined_call_operand.hbm [shape: f32[16,128], index: 2, kind: input, shape index: {}]   ;;  %s1110_s3 = inlined_call_operand.hbm [shape: f32[16,128], index: 3, kind: input, shape index: {}]   ;;  %s1111_s4 = inlined_call_operand.hbm [shape: f32[16,128], index: 4, kind: output, shape index: {}]  }
   0x1   :  { %1124 = sst [smem:[#allocation20_spill]] %s1109_s2 }
   0x2   :  { %9 = vsyncpa [#allocation5], 0 }
   0x3   :  { %10 = vsyncpa [#allocation3], 0 }
   0x4   :  { %12 = vsyncpa [#allocation3 + $0x1], 0 }
   0x5   :  { %13 = vsyncpa [#allocation8], 0 }
   0x6   :  { %15 = vsyncpa [#allocation8 + $0x1], 0 }
   0x7   :  { %16 = vsyncpa [#allocation4], 0 }
   0x8   :  { %18 = vsyncpa [#allocation4 + $0x1], 0  ;;  %s817_s15 = smov 0   ;;  %s819_s16 = smov 0  }
   0x9   :  { %s821_s17 = smov 0   ;;  %s823_s18 = smov 0  }
   0xa   :  { %s825_s19 = smov 0   ;;  %s827_s20 = smov 0  }
   0xb LB: > { %1125 = sst [smem:[#allocation15_spill]] %s781_s19  ;;  %s36_s21 = sadd.s32 1, %s781_s19  ;;  %s785_s20 = sphi %s827_s20, %s24_s20   ;;  %s781_s19 = sphi %s825_s19, %s1152_s19   ;;  %s777_s18 = sphi %s823_s18, %s1151_s18   ;;  %s773_s17 = sphi %s821_s17, %s1155_s17   ;;  %s769_s16 = sphi %s819_s16, %s1154_s16   ;;  %s765_s15 = sphi %s817_s15, %s1153_s15  }
   0xc   : > { %1126 = sst [smem:[#allocation16_spill]] %s785_s20  ;;  %s66_s22 = sadd.s32 1, %s773_s17 }
   0xd   : > { %p38_p0 = scmp.ge.s32.totalorder %s36_s21, 2  ;;  %p1112_p1 = scmp.ne.s32.totalorder %s773_s17, %s769_s16 }
   0xe   : > { %p74_p2 = scmp.eq.s32.totalorder %s785_s20, 0  ;;  %p540_p5 = scmp.lt.s32.totalorder %s785_s20, 2 }
   0xf   : > { %s1157_s21 = smov (%p38_p0, %s36_s21), 0  ;;  %s196_s24 = sand.u32 1, %s773_s17  }
  0x10   : > { %1127 = sst [smem:[#allocation17_spill]] %s1157_s21  ;;  %p75_p4 = por %p74_p2, %p1112_p1 }
  0x11   : > { %s61_s23 = ssub.s32 %s781_s19, %s1157_s21  ;;  %s864_s25 = sshll.u32 %s196_s24, 3 }
  0x12   : > { %p64_p6 = scmp.eq.s32.totalorder %s61_s23, 0  ;;  %s867_s26 = sshll.u32 %s781_s19, 7 }
  0x13   : > { %p869_p7 = pnand %p540_p5, %p75_p4  ;;  %s215_s29 = sand.u32 1, %s785_s20  }
  0x14   : > { %s874_s28 = scalar_select %p64_p6, %s773_s17, %s66_s22  }
  0x15   : > { %s1128_s27 = scalar_select %p869_p7, 1, 0 }
  0x16   : > { %1129 = sst [smem:[#allocation18_spill]] %s874_s28  ;;  %s1130_s2 = sld [smem:[#allocation20_spill]] }
  0x17   : > { %s219_s7 = scalar_lea.vmem [#allocation7], %s864_s25  ;;  %s886_s9 = scalar_lea.sflag [#allocation8], %s215_s29 }
  0x18   : > { %s227_s8 = sshll.u32 %s219_s7, 4  ;;  %p892_p9 = pneg %p869_p7  ;;  %s884_s8 = int_to_ptr.vmem [resolvable:$true] %s227_s8 }
  0x1c   : > { %s881_s6 = scalar_lea.hbm %s1130_s2, %s867_s26  ;;  %s597_s14 = scalar_lea.hbm %s1130_s2, 256 }
  0x1d   : > { %s592_s10 = scalar_lea.hbm %s881_s6, 128  ;;  %p598_p12 = scmp.lt.u32.totalorder %s881_s6, %s1130_s2 }
  0x1e   : > { %p593_p8 = scmp.ne.s32.totalorder %s881_s6, %s592_s10  ;;  %p599_p13 = scmp.lt.u32.totalorder %s597_s14, %s592_s10 }
  0x1f   : > { %p601_p2 = scmp.lt.u32.totalorder %s592_s10, %s881_s6 }
  0x20   : > { %p595_p10 = pnand %p892_p9, %p593_p8  ;;  %p600_p0 = por %p599_p13, %p598_p12 }
  0x22   : > { %p596_p11 = pneg %p595_p10  ;;  %p602_p4 = por %p601_p2, %p600_p0 }
  0x24   : > { %p603_p5 = pnand %p602_p4, %p596_p11 }
  0x26   : > { %606 = shalt.err (!%p603_p5)
}
  0x27   : > { %s607_s29 = scalar_lea.vmem %s884_s8, 128  ;;  %s787_s30 = smov [#allocation7]  }
  0x28   : > { %p608_p6 = scmp.ne.s32.totalorder %s884_s8, %s607_s29  ;;  %s612_s5 = sshll.u32 %s787_s30, 4  ;;  %s613_s5 = int_to_ptr.vmem [resolvable:$false] %s612_s5 }
  0x29   : > { %s614_s7 = scalar_lea.vmem %s613_s5, 256  ;;  %p615_p3 = scmp.lt.s32.totalorder %s884_s8, %s613_s5 }
  0x2a   : > { %p610_p8 = pnand %p608_p6, %p892_p9  ;;  %p616_p1 = scmp.lt.s32.totalorder %s614_s7, %s607_s29 }
  0x2c   : > { %p611_p10 = pneg %p610_p8  ;;  %p617_p12 = por %p616_p1, %p615_p3 }
  0x2e   : > { %p618_p13 = pnand %p617_p12, %p611_p10 }
  0x30   : > { %621 = shalt.err (!%p618_p13)
}
  0x31   : > { %531 = dma.hbm_to_vmem [thread:$0]  (!%p869_p7), %s881_s6, 128, %s884_s8, %s886_s9  }
  0x32   : > { %s917_s10 = sadd.s32 4294967295, %s785_s20   ;;  %s487_s12 = sadd.s32 4294967294, %s785_s20  }
  0x33   : > { %p79_p1 = scmp.ne.s32.totalorder %s769_s16, %s765_s15  ;;  %p1118_p3 = scmp.eq.s32.totalorder %s917_s10, 0 }
  0x34   : > { %p161_p11 = scmp.eq.s32.totalorder %s917_s10, 1  ;;  %p167_p0 = scmp.eq.s32.totalorder %s487_s12, 1 }
  0x35   : > { %p488_p2 = scmp.ge.s32.totalorder %s785_s20, 1  ;;  %p927_p4 = por %p1118_p3, %p79_p1 }
  0x36   : > { %p1133_p5 = scmp.ne.s32.totalorder %s773_s17, %s769_s16  ;;  %p938_p8 = por %p167_p0, %p79_p1 }
  0x37   : > { %s1132_s13 = scalar_select %p927_p4, 1, 0 }
  0x38   : > { %p934_p6 = por %p161_p11, %p1133_p5  ;;  %p174_p10 = scmp.lt.s32.totalorder %s785_s20, 3 }
  0x39   : > { %s1135_s8 = scalar_select %p938_p8, 1, 0 }
  0x3a   : > { %s1134_s6 = scalar_select %p934_p6, 1, 0 }
  0x3b   : > { %1136 = sst [smem:[#allocation19_spill]] %s1135_s8  ;;  %p943_p12 = pnand %p488_p2, %p174_p10 }
  0x3c   : > { %s951_s29 = scalar_lea.hbm %s1108_s1, %s867_s26  ;;  %s200_s30 = scalar_lea.vmem [#allocation6], %s864_s25 }
  0x3d   : > { %s1137_s14 = scalar_select %p943_p12, 1, 0 }
  0x3e   : > { %p521_p13 = pneg %p943_p12  ;;  %s208_s5 = sshll.u32 %s200_s30, 4  ;;  %s956_s5 = int_to_ptr.vmem [resolvable:$true] %s208_s5 }
  0x3f   : > { %s968_s23 = scalar_lea.hbm %s1110_s3, %s867_s26  ;;  %s197_s2 = scalar_lea.sflag [#allocation3], %s196_s24 }
  0x40   : > { %p960_p1 = pnand %p521_p13, %p1118_p3  ;;  %s622_s21 = scalar_lea.hbm %s951_s29, 128 }
  0x41   : > { %p623_p11 = scmp.ne.s32.totalorder %s951_s29, %s622_s21  ;;  %s627_s28 = scalar_lea.hbm %s1108_s1, 256 }
  0x42   : > { %s1138_s7 = scalar_select %p960_p1, 1, 0 }
  0x43   : > { %p625_p0 = pnand %p623_p11, %p892_p9  ;;  %p628_p5 = scmp.lt.u32.totalorder %s951_s29, %s1108_s1 }
  0x44   : > { %p629_p10 = scmp.lt.u32.totalorder %s627_s28, %s622_s21  ;;  %p631_p3 = scmp.lt.u32.totalorder %s622_s21, %s951_s29 }
  0x45   : > { %p626_p2 = pneg %p625_p0 }
  0x46   : > { %p630_p13 = por %p629_p10, %p628_p5 }
  0x48   : > { %p632_p8 = por %p631_p3, %p630_p13 }
  0x4a   : > { %p633_p6 = pnand %p632_p8, %p626_p2 }
  0x4c   : > { %636 = shalt.err (!%p633_p6)
}
  0x4d   : > { %s637_s24 = scalar_lea.vmem %s956_s5, 128  ;;  %s788_s19 = smov [#allocation6]  }
  0x4e   : > { %p638_p11 = scmp.ne.s32.totalorder %s956_s5, %s637_s24  ;;  %s642_s26 = sshll.u32 %s788_s19, 4  ;;  %s643_s26 = int_to_ptr.vmem [resolvable:$false] %s642_s26 }
  0x4f   : > { %s644_s20 = scalar_lea.vmem %s643_s26, 256  ;;  %p645_p12 = scmp.lt.s32.totalorder %s956_s5, %s643_s26 }
  0x50   : > { %p640_p0 = pnand %p638_p11, %p892_p9  ;;  %p646_p1 = scmp.lt.s32.totalorder %s644_s20, %s637_s24 }
  0x52   : > { %p641_p4 = pneg %p640_p0  ;;  %p647_p5 = por %p646_p1, %p645_p12 }
  0x54   : > { %p648_p10 = pnand %p647_p5, %p641_p4 }
  0x56   : > { %651 = shalt.err (!%p648_p10)
}
  0x57   : > { %528 = dma.hbm_to_vmem [thread:$0]  (!%p869_p7), %s951_s29, 128, %s956_s5, %s197_s2  }
  0x58   : > { %s238_s21 = scalar_lea.vmem [#allocation9], %s864_s25  ;;  %s652_s22 = scalar_lea.hbm %s1107_s0, 16 }
  0x59   : > { %s246_s28 = sshll.u32 %s238_s21, 4  ;;  %p653_p3 = scmp.ne.s32.totalorder %s1107_s0, %s652_s22  ;;  %s247_s28 = int_to_ptr.vmem [resolvable:$true] %s246_s28 }
  0x5a   : > { %p1139_p6 = scmp.ne.s32.totalorder %s1138_s7, 0  ;;  %p659_p1 = scmp.lt.u32.totalorder %s652_s22, %s1107_s0 }
  0x5c   : > { %p654_p4 = pneg %p1139_p6 }
  0x5e   : > { %p655_p8 = pnand %p654_p4, %p653_p3 }
  0x60   : > { %p656_p12 = pneg %p655_p8 }
  0x62   : > { %p661_p2 = pnand %p659_p1, %p656_p12 }
  0x64   : > { %664 = shalt.err (!%p661_p2)
}
  0x65   : > { %s789_s2 = smov [#allocation2]   ;;  %s665_s5 = scalar_lea.hbm %s968_s23, 128 }
  0x66   : > { %524 = dma.hbm_to_smem (!%p1139_p6), %s1107_s0, 16, %s789_s2, [#allocation5]  }
  0x67   : > { %p666_p13 = scmp.ne.s32.totalorder %s968_s23, %s665_s5  ;;  %s670_s8 = scalar_lea.hbm %s1110_s3, 256 }
  0x68   : > { %p671_p5 = scmp.lt.u32.totalorder %s968_s23, %s1110_s3  ;;  %p672_p10 = scmp.lt.u32.totalorder %s670_s8, %s665_s5 }
  0x69   : > { %p668_p11 = pnand %p666_p13, %p892_p9  ;;  %p674_p4 = scmp.lt.u32.totalorder %s665_s5, %s968_s23 }
  0x6a   : > { %p673_p3 = por %p672_p10, %p671_p5 }
  0x6b   : > { %p669_p0 = pneg %p668_p11 }
  0x6c   : > { %p675_p8 = por %p674_p4, %p673_p3 }
  0x6e   : > { %p676_p12 = pnand %p675_p8, %p669_p0 }
  0x70   : > { %679 = shalt.err (!%p676_p12)
}
  0x71   : > { %s680_s22 = scalar_lea.vmem %s247_s28, 128  ;;  %s790_s30 = smov [#allocation9]  }
  0x72   : > { %p681_p6 = scmp.ne.s32.totalorder %s247_s28, %s680_s22  ;;  %s685_s19 = sshll.u32 %s790_s30, 4  ;;  %s686_s19 = int_to_ptr.vmem [resolvable:$false] %s685_s19 }
  0x73   : > { %s687_s24 = scalar_lea.vmem %s686_s19, 256  ;;  %p688_p13 = scmp.lt.s32.totalorder %s247_s28, %s686_s19 }
  0x74   : > { %p683_p1 = pnand %p681_p6, %p892_p9  ;;  %p689_p11 = scmp.lt.s32.totalorder %s687_s24, %s680_s22 }
  0x76   : > { %p684_p2 = pneg %p683_p1  ;;  %p690_p7 = por %p689_p11, %p688_p13 }
  0x78   : > { %p691_p5 = pnand %p690_p7, %p684_p2 }
  0x7a   : > { %694 = shalt.err (!%p691_p5)
}
  0x7b   : > { %p1140_p10 = scmp.ne.s32.totalorder %s1128_s27, 0  ;;  %p1141_p0 = scmp.ne.s32.totalorder %s1137_s14, 0 }
  0x7c   : > { %p1142_p9 = scmp.eq.s32.totalorder (!%p1141_p0), %s917_s10, 0 }
  0x7d   : > { %534 = dma.hbm_to_vmem [thread:$0]  (!%p1140_p10), %s968_s23, 128, %s247_s28, %s886_s9  }
  0x7e   : > { %255 = sbr.rel (%p1141_p0) target bundleno = 170 (0xaa), region = 36 }
  0x85   : > { %748 = dma.done.wait (%p1142_p9), [#allocation5], 16   ;;  %p1143_p3 = pmov %p1142_p9 }
  0x86   : > { %s1035_s11 = sand.u32 1, %s769_s16   ;;  %p1144_p7 = scmp.ne.s32.totalorder %s1132_s13, 0 }
  0x87   : > { %750 = vsyncadd (%p1143_p3), [#allocation5], 4294967280  ;;  %s1038_s26 = sshll.u32 %s1035_s11, 3  ;;  %s262_s27 = scalar_lea.sflag [#allocation3], %s1035_s11 }
  0x88   : > { %s265_s9 = scalar_lea.vmem [#allocation6], %s1038_s26 }
  0x89   : > { %752 = dma.done.wait (%p1144_p7), %s262_s27, 128  }
  0x8a   : > { %754 = vsyncadd (%p1144_p7), %s262_s27, 4294967168  ;;  %s270_s14 = sand.u32 1, %s917_s10   ;;  %s274_s28 = scalar_lea.vmem [#allocation7], %s1038_s26 }
  0x8b   : > { %s271_s23 = scalar_lea.sflag [#allocation8], %s270_s14 }
  0x8c   : > { %756 = dma.done.wait (%p1144_p7), %s271_s23, 256  }
  0x8d   : > { %758 = vsyncadd (%p1144_p7), %s271_s23, 4294967040  ;;  %s283_s2 = scalar_lea.vmem [#allocation9], %s1038_s26 }
  0x8e   : > { %288 = sfence }
  0x8f   : > { %s319_s25 = sld [smem:[#allocation2]]  ;;  %s503_s29 = sld [smem:[#allocation2 + $0x1]]  ;;  %v322_v0 = vld [vmem:[%s265_s9] sm:$0xff]  ;;  %v323_v1 = vld [vmem:[%s274_s28] sm:$0xff] }
  0x90   : > { %s504_s5 = sld [smem:[#allocation2 + $0x2]]  ;;  %v324_v2 = vld [vmem:[%s283_s2] sm:$0xff]  ;;  %s318_s10 = scalar_lea.vmem [#allocation10], %s1038_s26 }
  0x91   : > { %s349_s13 = sshll.u32 %s318_s10, 4  ;;  %s506_s20 = sshll.u32 %s777_s18, 7  ;;  %s1055_s13 = int_to_ptr.vmem [resolvable:$true] %s349_s13 }
  0x92   : > { %s1060_s7 = scalar_lea.hbm %s1111_s4, %s506_s20  ;;  %s335_s12 = scalar_lea.sflag [#allocation4], %s1035_s11 }
  0x93   : > { %s695_s22 = scalar_lea.vmem %s1055_s13, 128  ;;  %p1145_p8 = scmp.ne.s32.totalorder %s1134_s6, 0 }
  0x94   : > { %p696_p4 = scmp.ne.s32.totalorder %s1055_s13, %s695_s22  ;;  %s791_s18 = smov [#allocation10]  }
  0x95   : > { %v325_v3 = vstv %s319_s25  ;;  %v327_v5 = vstv %s503_s29  ;;  %s699_s30 = sshll.u32 %s791_s18, 4  ;;  %s700_s30 = int_to_ptr.vmem [resolvable:$false] %s699_s30 }
  0x96   : > { %v326_v4 = vmul.f32 %v325_v3, %v322_v0  ;;  %v330_v6 = vstv %s504_s5  ;;  %v328_v7 = vmul.f32 %v327_v5, %v323_v1  ;;  %p697_p12 = pnand %p696_p4, %p1145_p8  ;;  %s701_s19 = scalar_lea.vmem %s700_s30, 256 }
  0x97   : > { %v331_v8 = vmul.f32 %v330_v6, %v324_v2  ;;  %p702_p1 = scmp.lt.s32.totalorder %s1055_s13, %s700_s30  ;;  %p703_p2 = scmp.lt.s32.totalorder %s701_s19, %s695_s22 }
  0x98   : > { %v329_v9 = vadd.f32 %v328_v7, %v326_v4  ;;  %p698_p6 = pneg %p697_p12 }
  0x99   : > { %p704_p13 = por %p703_p2, %p702_p1 }
  0x9a   : > { %v332_v10 = vadd.f32 %v331_v8, %v329_v9 }
  0x9b   : > { %p705_p11 = pnand %p704_p13, %p698_p6 }
  0x9c   : > { %333 = vst [vmem:[%s318_s10] sm:$0xff] %v332_v10 }
  0x9d   : > { %708 = shalt.err (!%p705_p11)
}
  0x9e   : > { %s709_s24 = scalar_lea.hbm %s1060_s7, 128  ;;  %s713_s27 = scalar_lea.hbm %s1111_s4, 256 }
  0x9f   : > { %p710_p5 = scmp.ne.s32.totalorder %s1060_s7, %s709_s24  ;;  %p714_p9 = scmp.lt.u32.totalorder %s1060_s7, %s1111_s4 }
  0xa0   : > { %p715_p3 = scmp.lt.u32.totalorder %s713_s27, %s709_s24  ;;  %p717_p4 = scmp.lt.u32.totalorder %s709_s24, %s1060_s7 }
  0xa1   : > { %p711_p10 = pnand %p710_p5, %p1145_p8 }
  0xa2   : > { %p716_p7 = por %p715_p3, %p714_p9 }
  0xa3   : > { %p712_p0 = pneg %p711_p10 }
  0xa4   : > { %p718_p12 = por %p717_p4, %p716_p7 }
  0xa6   : > { %p719_p6 = pnand %p718_p12, %p712_p0 }
  0xa8   : > { %722 = shalt.err (!%p719_p6)
}
  0xa9   : > { %519 = dma.vmem_to_hbm [thread:$0]  (%p1145_p8), %s1055_s13, 128, %s1060_s7, %s335_s12  }
  0xaa PF: > { %s1146_s23 = sld [smem:[#allocation19_spill]]  ;;  %s1147_s28 = sld [smem:[#allocation16_spill]] }
  0xab   : > { %s361_s2 = sand.u32 1, %s765_s15  }
  0xac   : > { %s362_s25 = scalar_lea.sflag [#allocation4], %s361_s2 }
  0xb0   : > { %p1148_p1 = scmp.ne.s32.totalorder %s1146_s23, 0  ;;  %p1149_p2 = scmp.ge.s32.totalorder %s1147_s28, 2 }
  0xb2   : > { %p536_p13 = pnand %p1149_p2, %p1148_p1 }
  0xb4   : > { %760 = dma.done.wait (!%p536_p13), %s362_s25, 128  }
  0xb5   : > { %762 = vsyncadd (!%p536_p13), %s362_s25, 4294967168  ;;  %s24_s20 = sadd.s32 1, %s1147_s28   ;;  %s1150_s6 = sld [smem:[#allocation18_spill]] }
  0xb6   : > { %p21_p11 = scmp.ge.s32.totalorder %s24_s20, 4   ;;  %s1151_s18 = sld [smem:[#allocation15_spill]] }
  0xb7   : > { %s1152_s19 = sld [smem:[#allocation17_spill]]  ;;  %s1153_s15 = smov %s769_s16 }
  0xb8   : > { %s1154_s16 = smov %s773_s17  ;;  %23 = sbr.rel (!%p21_p11) target bundleno = 11 (0xb), region = 110 }
  0xbb   : > { %s1155_s17 = smov %s1150_s6 }
  0xbf   :  { %367 = vsyncpa [#allocation3], 1 }
  0xc0   :  { %369 = vsyncpa [#allocation3 + $0x1], 1 }
  0xc1   :  { %370 = vsyncpa [#allocation8], 1 }
  0xc2   :  { %372 = vsyncpa [#allocation8 + $0x1], 1 }
  0xc3   :  { %373 = vsyncpa [#allocation4], 1 }
  0xc4   :  { %375 = vsyncpa [#allocation4 + $0x1], 1 }
  0xc5   :  { %376 = vsyncpa [#allocation5], 1 }
  0xc6   :  { %378 = vsyncpa [#allocation5 + $0x1], 1 }

</bundles_post_ra>
